<compile_context>
chip_gen: v7x
topology: tpu7x:2x2x1
jax: 0.10.0
libtpu: 0.0.40
codegen_flags: <defaults>
</compile_context>

<pallas_src>
import functools

import jax
import jax.numpy as jnp
from jax.experimental import pallas as pl
from jax.experimental.pallas import tpu as pltpu


def _round_up(n, m):
    return (n + m - 1) // m * m


# Budget for the double-buffered input + output batch tiles (weights are tiny
# and fully resident on top of this).  Comfortably inside v5e's 16 MiB scoped
# default and v7x's 32 MiB scoped / 64 MiB physical VMEM.
_VMEM_TILE_BUDGET = 8 * 1024 * 1024


def _choose_tile_b(batch, bytes_per_row, max_tile_b):
    """Pick a lane-friendly batch tile: as big as the VMEM budget allows, with
    >=2 (and an even number of) grid steps when the batch is large enough so
    both v7x TensorCores get balanced work."""
    if batch <= 128:
        # Single (possibly edge-masked) tile; second-minor dim multiple of 8.
        return _round_up(max(batch, 8), 8)
    cap = _VMEM_TILE_BUDGET // (2 * bytes_per_row)          # 2x double-buffering
    cap = max(128, cap // 128 * 128)
    cap = min(cap, max(128, _round_up(max_tile_b, 128)))
    n_tiles = max(2, pl.cdiv(batch, cap))
    if n_tiles % 2:
        n_tiles += 1                                        # even step count
    return min(cap, _round_up(pl.cdiv(batch, n_tiles), 128))


def ae_kernel(x_ref, w1_ref, b1_ref, w2_ref, b2_ref, w3_ref, b3_ref,
              w4_ref, b4_ref, o_ref, *, exact_sigmoid):
    # x_ref: [tile_b, input_size] in the caller's natural layout / dtype.
    # Weights are pre-transposed to [in, out] in the compute dtype (bf16 by
    # default -> native MXU path); biases are [1, out] f32.  Every dot
    # accumulates in f32 (matches torch's .float() forward).
    cdt = w1_ref.dtype
    prec = jax.lax.Precision.HIGHEST if exact_sigmoid else None
    x = x_ref[...].astype(cdt)

    # encoder
    h = jnp.dot(x, w1_ref[...], preferred_element_type=jnp.float32,
                precision=prec) + b1_ref[...]
    h = jnp.maximum(h, 0.0)                                   # ReLU(True)
    h = jnp.dot(h.astype(cdt), w2_ref[...], preferred_element_type=jnp.float32,
                precision=prec) + b2_ref[...]
    h = jnp.maximum(h, 0.0)                                   # ReLU(True)

    # decoder
    h = jnp.dot(h.astype(cdt), w3_ref[...], preferred_element_type=jnp.float32,
                precision=prec) + b3_ref[...]
    h = jnp.maximum(h, 0.0)                                   # ReLU(True)
    z = jnp.dot(h.astype(cdt), w4_ref[...], preferred_element_type=jnp.float32,
                precision=prec) + b4_ref[...]

    # Sigmoid.  Exact divide on the strict f32 path; EUP exp + approx
    # reciprocal (separate VLIW slots, free while HBM-bound) on the fast path.
    e = jnp.exp(-z)
    if exact_sigmoid:
        o_ref[...] = (1.0 / (1.0 + e)).astype(o_ref.dtype)
    else:
        o_ref[...] = pl.reciprocal(1.0 + e, approx=True).astype(o_ref.dtype)


@functools.partial(jax.jit,
                   static_argnames=("max_tile_b", "io_dtype", "compute_dtype"))
def ae_forward(x, params, max_tile_b=8192, io_dtype=jnp.bfloat16,
               compute_dtype=None):
    """Autoencoder forward pass as a single fused Pallas kernel.

    x: [B, input_size] (any float dtype; read directly, no wrapper copies).
    params: dict with PyTorch-native w1..w4 [out, in] and b1..b4 [out].
    Returns [B, input_size] in `io_dtype`.
    """
    if compute_dtype is None:
        compute_dtype = io_dtype
    exact_sigmoid = jnp.dtype(compute_dtype) == jnp.dtype(jnp.float32)

    B, input_size = x.shape
    c1 = params["w1"].shape[0]
    c2 = params["w2"].shape[0]

    # Kernel-layout params (a few KiB -> negligible; x itself is never copied).
    wts = [params[f"w{i}"].T.astype(compute_dtype) for i in (1, 2, 3, 4)]  # [in,out]
    bss = [params[f"b{i}"].reshape(1, -1).astype(jnp.float32) for i in (1, 2, 3, 4)]

    io_bytes = jnp.dtype(io_dtype).itemsize
    x_bytes = jnp.dtype(x.dtype).itemsize
    bytes_per_row = input_size * (x_bytes + io_bytes)
    tile_b = _choose_tile_b(B, bytes_per_row, max_tile_b)
    grid = pl.cdiv(B, tile_b)   # ragged tail -> Pallas edge-block masking, no pad

    def full_spec(arr):
        # Parameters are tiny: keep them fully VMEM-resident (block == array).
        return pl.BlockSpec(arr.shape, lambda i: (0, 0))

    param_args, param_specs = [], []
    for w, b in zip(wts, bss):
        param_args += [w, b]
        param_specs += [full_spec(w), full_spec(b)]

    flops = 2 * B * (input_size * c1 + c1 * c2 + c2 * c1 + c1 * input_size)
    weight_bytes = sum(int(a.size) * jnp.dtype(a.dtype).itemsize for a in param_args)
    cost = pl.CostEstimate(
        flops=int(flops),
        transcendentals=int(B * input_size),
        bytes_accessed=int(B * input_size * (x_bytes + io_bytes) + weight_bytes),
    )

    kernel = functools.partial(ae_kernel, exact_sigmoid=exact_sigmoid)

    out = pl.pallas_call(
        kernel,
        out_shape=jax.ShapeDtypeStruct((B, input_size), io_dtype),
        grid_spec=pltpu.PrefetchScalarGridSpec(
            num_scalar_prefetch=0,
            grid=(grid,),
            in_specs=[pl.BlockSpec((tile_b, input_size), lambda i: (i, 0))]
                     + param_specs,
            out_specs=pl.BlockSpec((tile_b, input_size), lambda i: (i, 0)),
        ),
        compiler_params=pltpu.CompilerParams(
            dimension_semantics=("parallel",),
            vmem_limit_bytes=32 * 1024 * 1024,
        ),
        cost_estimate=cost,
    )(x, *param_args)
    return out


def init_params(key, input_size, coder_size_1, coder_size_2):
    """Deterministic init mimicking nn.Linear defaults (uniform +/-1/sqrt(fan_in)).

    Stored PyTorch-native: weights [out, in], biases [out]."""
    def linear(key, fan_in, fan_out):
        kw, kb = jax.random.split(key)
        bound = 1.0 / jnp.sqrt(fan_in)
        w = jax.random.uniform(kw, (fan_out, fan_in), jnp.float32, -bound, bound)
        b = jax.random.uniform(kb, (fan_out,), jnp.float32, -bound, bound)
        return w, b

    k1, k2, k3, k4 = jax.random.split(key, 4)
    w1, b1 = linear(k1, input_size, coder_size_1)
    w2, b2 = linear(k2, coder_size_1, coder_size_2)
    w3, b3 = linear(k3, coder_size_2, coder_size_1)
    w4, b4 = linear(k4, coder_size_1, input_size)
    return dict(w1=w1, b1=b1, w2=w2, b2=b2, w3=w3, b3=b3, w4=w4, b4=b4)


def ae_forward_ref(x, params):
    """Pure-JAX f32 reference matching the PyTorch forward."""
    x = x.astype(jnp.float32)
    h = jnp.maximum(x @ params["w1"].T + params["b1"], 0.0)
    h = jnp.maximum(h @ params["w2"].T + params["b2"], 0.0)
    h = jnp.maximum(h @ params["w3"].T + params["b3"], 0.0)
    return jax.nn.sigmoid(h @ params["w4"].T + params["b4"])


if __name__ == "__main__":
    key = jax.random.PRNGKey(0)
    k_params, k_x1, k_x2 = jax.random.split(key, 3)

    input_size, coder_size_1, coder_size_2 = 32, 16, 8
    params = init_params(k_params, input_size, coder_size_1, coder_size_2)

    # 1) Small batch, strict f32 path (f32 operands, exact sigmoid): parity
    #    with the PyTorch .float() forward.
    x_small = jax.random.normal(k_x1, (16, input_size), dtype=jnp.float32)
    out_f32 = jax.block_until_ready(
        ae_forward(x_small, params, io_dtype=jnp.float32))
    ref_f32 = ae_forward_ref(x_small, params)
    assert out_f32.shape == (16, input_size)
    assert jnp.allclose(out_f32, ref_f32, atol=2e-3, rtol=0), \
        "f32 mismatch vs reference"

    # 2) Larger batch, default bf16 fast path: >=2 lane-aligned tiles plus a
    #    ragged tail handled by Pallas edge-block masking (no jnp.pad copy).
    x_big = jax.random.normal(k_x2, (300, input_size), dtype=jnp.float32)
    out_bf16 = jax.block_until_ready(ae_forward(x_big, params))
    ref_big = ae_forward_ref(x_big, params)
    assert out_bf16.shape == (300, input_size)
    assert out_bf16.dtype == jnp.bfloat16
    assert jnp.allclose(out_bf16.astype(jnp.float32), ref_big, atol=3e-2, rtol=0), \
        "bf16 mismatch vs reference"

    print("KERNEL_OK")
</pallas_src>

<mosaic_0001>
module attributes {stable_mosaic.version = 11 : i64} {
  func.func @ae_kernel(%arg0: i32, %arg1: memref<16x32xf32, #tpu.memory_space<vmem>>, %arg2: memref<32x16xf32, #tpu.memory_space<vmem>>, %arg3: memref<1x16xf32, #tpu.memory_space<vmem>>, %arg4: memref<16x8xf32, #tpu.memory_space<vmem>>, %arg5: memref<1x8xf32, #tpu.memory_space<vmem>>, %arg6: memref<8x16xf32, #tpu.memory_space<vmem>>, %arg7: memref<1x16xf32, #tpu.memory_space<vmem>>, %arg8: memref<16x32xf32, #tpu.memory_space<vmem>>, %arg9: memref<1x32xf32, #tpu.memory_space<vmem>>, %arg10: memref<16x32xf32, #tpu.memory_space<vmem>>) attributes {dimension_semantics = [#tpu.dimension_semantics<parallel>], iteration_bounds = array<i64: 1>, scalar_prefetch = 0 : i64, scratch_operands = 0 : i64, tpu.core_type = #tpu.core_type<tc>, window_params = [{transform_indices = @transform_0, window_bounds = array<i64: 16, 32>}, {pipeline_mode = #tpu.pipeline_mode<synchronous>, transform_indices = @transform_1, window_bounds = array<i64: 32, 16>}, {pipeline_mode = #tpu.pipeline_mode<synchronous>, transform_indices = @transform_2, window_bounds = array<i64: 1, 16>}, {pipeline_mode = #tpu.pipeline_mode<synchronous>, transform_indices = @transform_3, window_bounds = array<i64: 16, 8>}, {pipeline_mode = #tpu.pipeline_mode<synchronous>, transform_indices = @transform_4, window_bounds = array<i64: 1, 8>}, {pipeline_mode = #tpu.pipeline_mode<synchronous>, transform_indices = @transform_5, window_bounds = array<i64: 8, 16>}, {pipeline_mode = #tpu.pipeline_mode<synchronous>, transform_indices = @transform_6, window_bounds = array<i64: 1, 16>}, {pipeline_mode = #tpu.pipeline_mode<synchronous>, transform_indices = @transform_7, window_bounds = array<i64: 16, 32>}, {pipeline_mode = #tpu.pipeline_mode<synchronous>, transform_indices = @transform_8, window_bounds = array<i64: 1, 32>}, {transform_indices = @transform_9, window_bounds = array<i64: 16, 32>}]} {
    %c0 = arith.constant 0 : index
    %c0_0 = arith.constant 0 : index
    %0 = vector.load %arg1[%c0, %c0_0] : memref<16x32xf32, #tpu.memory_space<vmem>>, vector<16x32xf32>
    %c0_1 = arith.constant 0 : index
    %c0_2 = arith.constant 0 : index
    %1 = vector.load %arg2[%c0_1, %c0_2] : memref<32x16xf32, #tpu.memory_space<vmem>>, vector<32x16xf32>
    %cst = arith.constant dense<0.000000e+00> : vector<16x16xf32>
    %2 = tpu.matmul %0, %1, %cst {dimension_numbers = #tpu.dot_dimension_numbers<[1], [0], [0], [1], [0, 0, 1, 1], [], []>, precision = #tpu.contract_precision<fp32>} : vector<16x32xf32>, vector<32x16xf32>, vector<16x16xf32> -> vector<16x16xf32>
    %c0_3 = arith.constant 0 : index
    %c0_4 = arith.constant 0 : index
    %3 = vector.load %arg3[%c0_3, %c0_4] : memref<1x16xf32, #tpu.memory_space<vmem>>, vector<1x16xf32>
    %4 = vector.broadcast %3 : vector<1x16xf32> to vector<16x16xf32>
    %5 = arith.addf %2, %4 : vector<16x16xf32>
    %cst_5 = arith.constant 0.000000e+00 : f32
    %6 = vector.broadcast %cst_5 : f32 to vector<16x16xf32>
    %7 = arith.maximumf %5, %6 : vector<16x16xf32>
    %c0_6 = arith.constant 0 : index
    %c0_7 = arith.constant 0 : index
    %8 = vector.load %arg4[%c0_6, %c0_7] : memref<16x8xf32, #tpu.memory_space<vmem>>, vector<16x8xf32>
    %cst_8 = arith.constant dense<0.000000e+00> : vector<16x8xf32>
    %9 = tpu.matmul %7, %8, %cst_8 {dimension_numbers = #tpu.dot_dimension_numbers<[1], [0], [0], [1], [0, 0, 1, 1], [], []>, precision = #tpu.contract_precision<fp32>} : vector<16x16xf32>, vector<16x8xf32>, vector<16x8xf32> -> vector<16x8xf32>
    %c0_9 = arith.constant 0 : index
    %c0_10 = arith.constant 0 : index
    %10 = vector.load %arg5[%c0_9, %c0_10] : memref<1x8xf32, #tpu.memory_space<vmem>>, vector<1x8xf32>
    %11 = vector.broadcast %10 : vector<1x8xf32> to vector<16x8xf32>
    %12 = arith.addf %9, %11 : vector<16x8xf32>
    %cst_11 = arith.constant 0.000000e+00 : f32
    %13 = vector.broadcast %cst_11 : f32 to vector<16x8xf32>
    %14 = arith.maximumf %12, %13 : vector<16x8xf32>
    %c0_12 = arith.constant 0 : index
    %c0_13 = arith.constant 0 : index
    %15 = vector.load %arg6[%c0_12, %c0_13] : memref<8x16xf32, #tpu.memory_space<vmem>>, vector<8x16xf32>
    %cst_14 = arith.constant dense<0.000000e+00> : vector<16x16xf32>
    %16 = tpu.matmul %14, %15, %cst_14 {dimension_numbers = #tpu.dot_dimension_numbers<[1], [0], [0], [1], [0, 0, 1, 1], [], []>, precision = #tpu.contract_precision<fp32>} : vector<16x8xf32>, vector<8x16xf32>, vector<16x16xf32> -> vector<16x16xf32>
    %c0_15 = arith.constant 0 : index
    %c0_16 = arith.constant 0 : index
    %17 = vector.load %arg7[%c0_15, %c0_16] : memref<1x16xf32, #tpu.memory_space<vmem>>, vector<1x16xf32>
    %18 = vector.broadcast %17 : vector<1x16xf32> to vector<16x16xf32>
    %19 = arith.addf %16, %18 : vector<16x16xf32>
    %cst_17 = arith.constant 0.000000e+00 : f32
    %20 = vector.broadcast %cst_17 : f32 to vector<16x16xf32>
    %21 = arith.maximumf %19, %20 : vector<16x16xf32>
    %c0_18 = arith.constant 0 : index
    %c0_19 = arith.constant 0 : index
    %22 = vector.load %arg8[%c0_18, %c0_19] : memref<16x32xf32, #tpu.memory_space<vmem>>, vector<16x32xf32>
    %cst_20 = arith.constant dense<0.000000e+00> : vector<16x32xf32>
    %23 = tpu.matmul %21, %22, %cst_20 {dimension_numbers = #tpu.dot_dimension_numbers<[1], [0], [0], [1], [0, 0, 1, 1], [], []>, precision = #tpu.contract_precision<fp32>} : vector<16x16xf32>, vector<16x32xf32>, vector<16x32xf32> -> vector<16x32xf32>
    %c0_21 = arith.constant 0 : index
    %c0_22 = arith.constant 0 : index
    %24 = vector.load %arg9[%c0_21, %c0_22] : memref<1x32xf32, #tpu.memory_space<vmem>>, vector<1x32xf32>
    %25 = vector.broadcast %24 : vector<1x32xf32> to vector<16x32xf32>
    %26 = arith.addf %23, %25 : vector<16x32xf32>
    %cst_23 = arith.constant 0.000000e+00 : f32
    %27 = vector.broadcast %cst_23 : f32 to vector<16x32xf32>
    %28 = arith.subf %27, %26 : vector<16x32xf32>
    %29 = math.exp %28 : vector<16x32xf32>
    %cst_24 = arith.constant 1.000000e+00 : f32
    %30 = vector.broadcast %cst_24 : f32 to vector<16x32xf32>
    %31 = arith.addf %30, %29 : vector<16x32xf32>
    %cst_25 = arith.constant 1.000000e+00 : f32
    %32 = vector.broadcast %cst_25 : f32 to vector<16x32xf32>
    %33 = arith.divf %32, %31 : vector<16x32xf32>
    %c0_26 = arith.constant 0 : index
    %c0_27 = arith.constant 0 : index
    %34 = vector.load %arg10[%c0_26, %c0_27] : memref<16x32xf32, #tpu.memory_space<vmem>>, vector<16x32xf32>
    tpu.vector_store %arg10[%c0_26, %c0_27], %33 {strides = array<i32>} : memref<16x32xf32, #tpu.memory_space<vmem>>, vector<16x32xf32>,
    return
  }
  func.func @transform_0(%arg0: i32) -> (i32, i32) {
    %c0_i32 = arith.constant 0 : i32
    %c0_i32_0 = arith.constant 0 : i32
    return %arg0, %c0_i32 : i32, i32
  }
  func.func @transform_1(%arg0: i32) -> (i32, i32) {
    %c0_i32 = arith.constant 0 : i32
    %c0_i32_0 = arith.constant 0 : i32
    %c0_i32_1 = arith.constant 0 : i32
    return %c0_i32, %c0_i32_0 : i32, i32
  }
  func.func @transform_2(%arg0: i32) -> (i32, i32) {
    %c0_i32 = arith.constant 0 : i32
    %c0_i32_0 = arith.constant 0 : i32
    %c0_i32_1 = arith.constant 0 : i32
    return %c0_i32, %c0_i32_0 : i32, i32
  }
  func.func @transform_3(%arg0: i32) -> (i32, i32) {
    %c0_i32 = arith.constant 0 : i32
    %c0_i32_0 = arith.constant 0 : i32
    %c0_i32_1 = arith.constant 0 : i32
    return %c0_i32, %c0_i32_0 : i32, i32
  }
  func.func @transform_4(%arg0: i32) -> (i32, i32) {
    %c0_i32 = arith.constant 0 : i32
    %c0_i32_0 = arith.constant 0 : i32
    %c0_i32_1 = arith.constant 0 : i32
    return %c0_i32, %c0_i32_0 : i32, i32
  }
  func.func @transform_5(%arg0: i32) -> (i32, i32) {
    %c0_i32 = arith.constant 0 : i32
    %c0_i32_0 = arith.constant 0 : i32
    %c0_i32_1 = arith.constant 0 : i32
    return %c0_i32, %c0_i32_0 : i32, i32
  }
  func.func @transform_6(%arg0: i32) -> (i32, i32) {
    %c0_i32 = arith.constant 0 : i32
    %c0_i32_0 = arith.constant 0 : i32
    %c0_i32_1 = arith.constant 0 : i32
    return %c0_i32, %c0_i32_0 : i32, i32
  }
  func.func @transform_7(%arg0: i32) -> (i32, i32) {
    %c0_i32 = arith.constant 0 : i32
    %c0_i32_0 = arith.constant 0 : i32
    %c0_i32_1 = arith.constant 0 : i32
    return %c0_i32, %c0_i32_0 : i32, i32
  }
  func.func @transform_8(%arg0: i32) -> (i32, i32) {
    %c0_i32 = arith.constant 0 : i32
    %c0_i32_0 = arith.constant 0 : i32
    %c0_i32_1 = arith.constant 0 : i32
    return %c0_i32, %c0_i32_0 : i32, i32
  }
  func.func @transform_9(%arg0: i32) -> (i32, i32) {
    %c0_i32 = arith.constant 0 : i32
    %c0_i32_0 = arith.constant 0 : i32
    return %arg0, %c0_i32 : i32, i32
  }
}

</mosaic_0001>

<bundles_post_ra>
// kernel: ae_forward.1
= control target key start
LH: loop header
LB: loop body
LE: loop exit
PB: predicated region body
PF: predicated region fallthrough
CT: control target
= control target key end

     0   :  { %vm46_vm0 = vcmask 261120   ;;  %s2747_s0 = inlined_call_operand.vmem [shape: f32[16,32], index: 0, kind: input, shape index: {}]   ;;  %s2748_s1 = inlined_call_operand.vmem [shape: f32[32,16], index: 1, kind: input, shape index: {}]   ;;  %s2749_s2 = inlined_call_operand.vmem [shape: f32[1,16], index: 2, kind: input, shape index: {}]   ;;  %s2750_s3 = inlined_call_operand.vmem [shape: f32[16,8], index: 3, kind: input, shape index: {}]   ;;  %s2751_s4 = inlined_call_operand.vmem [shape: f32[1,8], index: 4, kind: input, shape index: {}]   ;;  %s2752_s5 = inlined_call_operand.vmem [shape: f32[8,16], index: 5, kind: input, shape index: {}]   ;;  %s2753_s6 = inlined_call_operand.vmem [shape: f32[1,16], index: 6, kind: input, shape index: {}]   ;;  %s2754_s7 = inlined_call_operand.vmem [shape: f32[16,32], index: 7, kind: input, shape index: {}]   ;;  %s2755_s8 = inlined_call_operand.vmem [shape: f32[1,32], index: 8, kind: input, shape index: {}]   ;;  %s2756_s9 = inlined_call_operand.hbm [shape: f32[16,32], index: 9, kind: output, shape index: {}]  }
   0x1   :  { %v35_v0 = vld [vmem:[%s2748_s1] sm:$0xff]  ;;  %v36_v1 = vld [vmem:[%s2748_s1 + $0x8] sm:$0xff]  ;;  %v37_v2 = vld [vmem:[%s2748_s1 + $0x10] sm:$0xff] }
   0x2   :  { %v54_v3 = vand.u32 4294901760, %v35_v0  ;;  %v57_v4 = vand.u32 4294901760, %v36_v1  ;;  %v38_v5 = vld [vmem:[%s2748_s1 + $0x18] sm:$0xff]  ;;  %v60_v6 = vand.u32 4294901760, %v37_v2  ;;  %v33_v7 = vld [vmem:[%s2747_s0] sm:$0xff]  ;;  %v34_v8 = vld [vmem:[%s2747_s0 + $0x8] sm:$0xff] }
   0x3   :  { %v63_v9 = vand.u32 4294901760, %v38_v5  ;;  %v48_v10 = vsel %vm46_vm0, %v33_v7, 0  ;;  %v51_v11 = vsel %vm46_vm0, %v34_v8, 0 }
   0x4   :  { %14 = vsyncpa [#allocation3], 0  ;;  %v2694_v12 = vpack.c.bf16 %v57_v4, %v54_v3  ;;  %v144_v13 = vsub.f32 %v35_v0, %v54_v3  ;;  %v151_v14 = vsub.f32 %v36_v1, %v57_v4  ;;  %v158_v15 = vsub.f32 %v37_v2, %v60_v6  ;;  %v583_v46 = vld [vmem:[%s2750_s3] sm:$0xff]  ;;  %v584_v47 = vld [vmem:[%s2750_s3 + $0x8] sm:$0xff]  ;;  %s2621_s10 = smov [#allocation2]  }
   0x5   :  { %v165_v16 = vsub.f32 %v38_v5, %v63_v9  ;;  %v122_v17 = vand.u32 4294901760, %v48_v10  ;;  %v132_v18 = vand.u32 4294901760, %v51_v11  ;;  %v2446_v21 = vpack.c.bf16 %v63_v9, %v60_v6  ;;  %v2156_v0 = vld [vmem:[%s2749_s2] ss:$0 sm:$0xff] }
   0x6   :  { %v145_v19 = vand.u32 4294901760, %v144_v13  ;;  %v152_v20 = vand.u32 4294901760, %v151_v14  ;;  %v159_v22 = vand.u32 4294901760, %v158_v15  ;;  %2443 = vmatprep.subr.bf16.mxu1 %v2694_v12  ;;  %v2458_v42 = vpack.c.bf16 %v151_v14, %v144_v13 }
   0x7   :  { %v166_v23 = vand.u32 4294901760, %v165_v16  ;;  %2281 = vmatprep.mubr.f32.mxu0 %v122_v17  ;;  %v123_v24 = vsub.f32 %v48_v10, %v122_v17  ;;  %v133_v25 = vsub.f32 %v51_v11, %v132_v18  ;;  %2445 = vmatpush3.bf16.msra.mxu1 %v2694_v12  ;;  %v2462_v43 = vpack.c.bf16 %v165_v16, %v158_v15 }
   0x8   :  { %v146_v26 = vsub.f32 %v144_v13, %v145_v19  ;;  %v153_v27 = vsub.f32 %v151_v14, %v152_v20  ;;  %v160_v28 = vsub.f32 %v158_v15, %v159_v22  ;;  %2447 = vmatprep.subr.bf16.mxu1 %v2446_v21  ;;  %v2474_v44 = vpack.c.bf16 %v152_v20, %v145_v19 }
   0x9   :  { %v167_v29 = vsub.f32 %v165_v16, %v166_v23  ;;  %v124_v30 = vand.u32 4294901760, %v123_v24  ;;  %v134_v31 = vand.u32 4294901760, %v133_v25  ;;  %v2478_v45 = vpack.c.bf16 %v166_v23, %v159_v22 }
   0xa   :  { %v147_v32 = vand.u32 4294901760, %v146_v26  ;;  %v154_v33 = vand.u32 4294901760, %v153_v27  ;;  %v161_v34 = vand.u32 4294901760, %v160_v28  ;;  %v600_v48 = vand.u32 4294901760, %v583_v46  ;;  %v2157_v27 = vld [vmem:[%s2751_s4] ss:$0 sm:$0xff] }
   0xb   :  { %v168_v35 = vand.u32 4294901760, %v167_v29  ;;  %2449 = vmatpush3.bf16.msra.mxu1 %v2446_v21  ;;  %v125_v36 = vsub.f32 %v123_v24, %v124_v30  ;;  %v135_v37 = vsub.f32 %v133_v25, %v134_v31  ;;  %v603_v49 = vand.u32 4294901760, %v584_v47 }
   0xc   :  { %v2450_v38 = vpack.c.bf16 %v154_v33, %v147_v32  ;;  %v688_v51 = vsub.f32 %v583_v46, %v600_v48  ;;  %vm592_vm1 = vcmask 130048   ;;  %vm1111_vm2 = vcmask 64512   ;;  %v1609_v46 = vld [vmem:[%s2754_s7] sm:$0xff] }
   0xd   :  { %v2454_v39 = vpack.c.bf16 %v168_v35, %v161_v34  ;;  %v126_v40 = vand.u32 4294901760, %v125_v36  ;;  %v136_v41 = vand.u32 4294901760, %v135_v37  ;;  %v2490_v50 = vpack.c.bf16 %v603_v49, %v600_v48 }
   0xe   :  { %2451 = vmatprep.subr.bf16.mxu0 %v2450_v38  ;;  %v695_v52 = vsub.f32 %v584_v47, %v603_v49  ;;  %v689_v53 = vand.u32 4294901760, %v688_v51  ;;  %v1610_v47 = vld [vmem:[%s2754_s7 + $0x8] sm:$0xff]  ;;  %v1625_v48 = vand.u32 4294901760, %v1609_v46 }
   0xf   :  { %2453 = vmatpush3.bf16.msra.mxu0 %v2450_v38  ;;  %2270 = vmatprep.mubr.f32.mxu1 %v126_v40  ;;  %v1628_v49 = vand.u32 4294901760, %v1610_v47 }
  0x10   :  { %2455 = vmatprep.subr.bf16.mxu0 %v2454_v39  ;;  %2271 = vmatmul.mubr.f32.vlgmr.msra.gmra.mrb[0].mxu1 %v136_v41  ;;  %v696_v54 = vand.u32 4294901760, %v695_v52  ;;  %v690_v55 = vsub.f32 %v688_v51, %v689_v53  ;;  %v2498_v60 = vpack.c.bf16 %v695_v52, %v688_v51 }
  0x11   :  { %2491 = vmatprep.subr.bf16.mxu1 %v2490_v50  ;;  %v1720_v51 = vsub.f32 %v1610_v47, %v1628_v49 }
  0x12   :  { %2493 = vmatpush3.bf16.msra.mxu1 %v2490_v50  ;;  %v697_v56 = vsub.f32 %v695_v52, %v696_v54  ;;  %v691_v57 = vand.u32 4294901760, %v690_v55  ;;  %v2506_v61 = vpack.c.bf16 %v696_v54, %v689_v53 }
  0x13   :  { %2457 = vmatpush3.bf16.msra.mxu0 %v2454_v39  ;;  %v1721_v53 = vand.u32 4294901760, %v1720_v51 }
  0x14   :  { %2459 = vmatprep.subr.bf16.mxu0 %v2458_v42  ;;  %v698_v58 = vand.u32 4294901760, %v697_v56 }
  0x15   :  { %v1722_v55 = vsub.f32 %v1720_v51, %v1721_v53 }
  0x16   :  { %2282 = vmatmul.mubr.f32.vlgmr.msra.gmra.mrb[0].mxu0 %v132_v18  ;;  %v2494_v59 = vpack.c.bf16 %v698_v58, %v691_v57 }
  0x17   :  { %2461 = vmatpush3.bf16.msra.mxu0 %v2458_v42  ;;  %2292 = vmatprep.mubr.f32.mxu0 %v123_v24  ;;  %v1723_v57 = vand.u32 4294901760, %v1722_v55 }
  0x18   :  { %2463 = vmatprep.subr.bf16.mxu0 %v2462_v43  ;;  %2495 = vmatprep.subr.bf16.mxu1 %v2494_v59 }
  0x1b   :  { %2465 = vmatpush3.bf16.msra.mxu0 %v2462_v43 }
  0x1c   :  { %2467 = vmatprep.subr.bf16.mxu0 %v2694_v12 }
  0x1e   :  { %2293 = vmatmul.mubr.f32.vlgmr.msra.gmra.mrb[0].mxu0 %v133_v25 }
  0x1f   :  { %2469 = vmatpush3.bf16.msra.mxu0 %v2694_v12  ;;  %2303 = vmatprep.mubr.f32.mxu0 %v124_v30 }
  0x20   :  { %2471 = vmatprep.subr.bf16.mxu0 %v2446_v21 }
  0x23   :  { %2473 = vmatpush3.bf16.msra.mxu0 %v2446_v21 }
  0x24   :  { %2475 = vmatprep.subr.bf16.mxu0 %v2474_v44 }
  0x26   :  { %2304 = vmatmul.mubr.f32.vlgmr.msra.gmra.mrb[0].mxu0 %v134_v31 }
  0x27   :  { %2477 = vmatpush3.bf16.msra.mxu0 %v2474_v44  ;;  %2314 = vmatprep.mubr.f32.mxu0 %v122_v17 }
  0x28   :  { %2479 = vmatprep.subr.bf16.mxu0 %v2478_v45 }
  0x2b   :  { %2481 = vmatpush3.bf16.msra.mxu0 %v2478_v45 }
  0x2c   :  { %2483 = vmatprep.subr.bf16.mxu0 %v2694_v12 }
  0x2e   :  { %2315 = vmatmul.mubr.f32.vlgmr.msra.gmra.mrb[0].mxu0 %v132_v18 }
  0x2f   :  { %2485 = vmatpush3.bf16.msra.mxu0 %v2694_v12  ;;  %2325 = vmatprep.mubr.f32.mxu0 %v122_v17 }
  0x30   :  { %2487 = vmatprep.subr.bf16.mxu0 %v2446_v21 }
  0x33   :  { %2489 = vmatpush3.bf16.msra.mxu0 %v2446_v21  ;;  %v1103_v21 = vld [vmem:[%s2752_s5] sm:$0xff] }
  0x34   :  { %v1119_v22 = vand.u32 4294901760, %v1103_v21 }
  0x36   :  { %2326 = vmatmul.mubr.f32.vlgmr.msra.gmra.mrb[0].mxu0 %v132_v18  ;;  %v1206_v23 = vsub.f32 %v1103_v21, %v1119_v22 }
  0x38   :  { %v1207_v24 = vand.u32 4294901760, %v1206_v23 }
  0x3a   :  { %v1208_v25 = vsub.f32 %v1206_v23, %v1207_v24 }
  0x3c   :  { %v1209_v26 = vand.u32 4294901760, %v1208_v25 }
  0xe3   :  { %v2272_v62 = vpop.f32.mrb[0].mxu1 }
  0xe4   :  { %v128_v63 = vpop.f32.mrb[1].mxu1  ;;  %v139_v1 = vadd.f32 %v2272_v62, %v2156_v0  ;;  %v2158_v62 = vld [vmem:[%s2753_s6] ss:$0 sm:$0xff] }
  0xe5   :  { %v129_v2 = vadd.f32 %v2156_v0, %v128_v63 }
 0x109   :  { %v2327_v3 = vpop.f32.mrb[0].mxu0 }
 0x10a   :  { %v2539_v4 = vadd.f32 %v2327_v3, %v139_v1  ;;  %v571_v5 = vpop.f32.mrb[1].mxu0 }
 0x10b   :  { %v2541_v6 = vadd.f32 %v571_v5, %v129_v2 }
 0x10c   :  { %v582_v7 = vmax.f32 %v2539_v4, 0.0 }
 0x10d   :  { %v581_v8 = vmax.f32 %v2541_v6, 0.0 }
 0x10e   :  { %v597_v9 = vsel %vm592_vm1, %v582_v7, 0 }
 0x10f   :  { %v676_v10 = vand.u32 4294901760, %v597_v9  ;;  %v594_v11 = vsel %vm592_vm1, %v581_v8, 0 }
 0x110   :  { %v666_v12 = vand.u32 4294901760, %v594_v11 }
 0x111   :  { %v677_v13 = vsub.f32 %v597_v9, %v676_v10 }
 0x112   :  { %v667_v14 = vsub.f32 %v594_v11, %v666_v12 }
 0x113   :  { %v678_v15 = vand.u32 4294901760, %v677_v13 }
 0x114   :  { %v668_v16 = vand.u32 4294901760, %v667_v14 }
 0x115   :  { %v679_v17 = vsub.f32 %v677_v13, %v678_v15 }
 0x116   :  { %v669_v18 = vsub.f32 %v667_v14, %v668_v16 }
 0x117   :  { %v680_v20 = vand.u32 4294901760, %v679_v17 }
 0x118   :  { %v670_v19 = vand.u32 4294901760, %v669_v18 }
 0x11a   :  { %2332 = vmatprep.mubr.f32.mxu1 %v670_v19  ;;  %v2159_v19 = vld [vmem:[%s2755_s8] ss:$0 sm:$0xff]  ;;  %s2145_s8 = sshll.u32 %s2621_s10, 4  ;;  %s2146_s8 = int_to_ptr.vmem [resolvable:$true] %s2145_s8 }
 0x11b   :  { %2333 = vmatmul.mubr.f32.vlgmr.msra.gmra.mrb[2].mxu1 %v680_v20  ;;  %s2597_s11 = scalar_lea.vmem %s2146_s8, 256  ;;  %p2602_p1 = scmp.lt.s32.totalorder %s2146_s8, %s2146_s8 }
 0x11c   :  { %2497 = vmatpush3.bf16.msra.mxu1 %v2494_v59  ;;  %2339 = vmatprep.mubr.f32.mxu1 %v666_v12  ;;  %v2514_v59 = vpack.c.bf16 %v1628_v49, %v1625_v48  ;;  %p2598_p0 = scmp.ne.s32.totalorder %s2146_s8, %s2597_s11  ;;  %p2603_p2 = scmp.lt.s32.totalorder %s2597_s11, %s2597_s11 }
 0x11d   :  { %2499 = vmatprep.subr.bf16.mxu1 %v2498_v60 }
 0x11e   :  { %p2604_p3 = por %p2603_p2, %p2602_p1 }
 0x120   :  { %p2605_p4 = pnand %p2604_p3, %p2598_p0 }
 0x123   :  { %2340 = vmatmul.mubr.f32.vlgmr.msra.gmra.mrb[2].mxu1 %v676_v10 }
 0x124   :  { %2501 = vmatpush3.bf16.msra.mxu1 %v2498_v60  ;;  %2346 = vmatprep.mubr.f32.mxu1 %v667_v14 }
 0x125   :  { %2503 = vmatprep.subr.bf16.mxu1 %v2490_v50 }
 0x12b   :  { %2347 = vmatmul.mubr.f32.vlgmr.msra.gmra.mrb[2].mxu1 %v677_v13 }
 0x12c   :  { %2505 = vmatpush3.bf16.msra.mxu1 %v2490_v50  ;;  %2353 = vmatprep.mubr.f32.mxu1 %v668_v16 }
 0x12d   :  { %2507 = vmatprep.subr.bf16.mxu1 %v2506_v61 }
 0x133   :  { %2354 = vmatmul.mubr.f32.vlgmr.msra.gmra.mrb[2].mxu1 %v678_v15 }
 0x134   :  { %2509 = vmatpush3.bf16.msra.mxu1 %v2506_v61  ;;  %2360 = vmatprep.mubr.f32.mxu1 %v666_v12 }
 0x135   :  { %2511 = vmatprep.subr.bf16.mxu1 %v2490_v50 }
 0x13b   :  { %2361 = vmatmul.mubr.f32.vlgmr.msra.gmra.mrb[2].mxu1 %v676_v10 }
 0x13c   :  { %2513 = vmatpush3.bf16.msra.mxu1 %v2490_v50  ;;  %2367 = vmatprep.mubr.f32.mxu1 %v666_v12  ;;  %v1713_v50 = vsub.f32 %v1609_v46, %v1625_v48 }
 0x13d   :  { %2370 = vmatprep.subr.mxu1 %v1119_v22 }
 0x13e   :  { %v1714_v52 = vand.u32 4294901760, %v1713_v50  ;;  %v2522_v60 = vpack.c.bf16 %v1720_v51, %v1713_v50 }
 0x140   :  { %v1715_v54 = vsub.f32 %v1713_v50, %v1714_v52  ;;  %v2530_v61 = vpack.c.bf16 %v1721_v53, %v1714_v52 }
 0x142   :  { %v1716_v56 = vand.u32 4294901760, %v1715_v54 }
 0x143   :  { %2368 = vmatmul.mubr.f32.vlgmr.msra.gmra.mrb[2].mxu1 %v676_v10 }
 0x144   :  { %2371 = vmatpush3.msra.mxu1 %v1119_v22  ;;  %v2518_v58 = vpack.c.bf16 %v1723_v57, %v1716_v56 }
 0x145   :  { %2375 = vmatprep.subr.mxu1 %v1209_v26 }
 0x146   :  { %2519 = vmatprep.subr.bf16.mxu0 %v2518_v58 }
 0x147   :  { %2521 = vmatpush3.bf16.msra.mxu0 %v2518_v58 }
 0x148   :  { %2523 = vmatprep.subr.bf16.mxu0 %v2522_v60 }
 0x216   :  { %v2369_v28 = vpop.f32.mrb[2].mxu1 }
 0x217   :  { %v2542_v29 = vadd.f32 %v2369_v28, %v2157_v27  ;;  %v1091_v30 = vpop.f32.mrb[3].mxu1 }
 0x218   :  { %v2543_v31 = vadd.f32 %v2157_v27, %v1091_v30 }
 0x219   :  { %v1102_v32 = vmax.f32 %v2542_v29, 0.0 }
 0x21a   :  { %v1101_v33 = vmax.f32 %v2543_v31, 0.0 }
 0x21b   :  { %v1116_v34 = vsel %vm1111_vm2, %v1102_v32, 0 }
 0x21c   :  { %v1194_v35 = vand.u32 4294901760, %v1116_v34  ;;  %v1113_v36 = vsel %vm1111_vm2, %v1101_v33, 0 }
 0x21d   :  { %v1184_v37 = vand.u32 4294901760, %v1113_v36 }
 0x21e   :  { %v1195_v38 = vsub.f32 %v1116_v34, %v1194_v35 }
 0x21f   :  { %v1185_v39 = vsub.f32 %v1113_v36, %v1184_v37 }
 0x220   :  { %v1196_v40 = vand.u32 4294901760, %v1195_v38 }
 0x221   :  { %v1186_v41 = vand.u32 4294901760, %v1185_v39 }
 0x222   :  { %v1197_v42 = vsub.f32 %v1195_v38, %v1196_v40 }
 0x223   :  { %v1187_v43 = vsub.f32 %v1185_v39, %v1186_v41 }
 0x224   :  { %v1198_v45 = vand.u32 4294901760, %v1197_v42 }
 0x225   :  { %v1188_v44 = vand.u32 4294901760, %v1187_v43 }
 0x227   :  { %2372 = vmatprep.mubr.f32.mxu1 %v1188_v44 }
 0x228   :  { %2373 = vmatmul.mubr.f32.vlgmr.msra.gmra.mrb[4].mxu1 %v1198_v45 }
 0x229   :  { %2376 = vmatpush3.msra.mxu1 %v1209_v26  ;;  %2377 = vmatprep.mubr.f32.mxu1 %v1184_v37 }
 0x22a   :  { %2380 = vmatprep.subr.mxu1 %v1206_v23 }
 0x230   :  { %2378 = vmatmul.mubr.f32.vlgmr.msra.gmra.mrb[4].mxu1 %v1194_v35 }
 0x231   :  { %2381 = vmatpush3.msra.mxu1 %v1206_v23  ;;  %2382 = vmatprep.mubr.f32.mxu1 %v1185_v39 }
 0x232   :  { %2385 = vmatprep.subr.mxu1 %v1119_v22 }
 0x238   :  { %2383 = vmatmul.mubr.f32.vlgmr.msra.gmra.mrb[4].mxu1 %v1195_v38 }
 0x239   :  { %2386 = vmatpush3.msra.mxu1 %v1119_v22  ;;  %2387 = vmatprep.mubr.f32.mxu1 %v1186_v41 }
 0x23a   :  { %2390 = vmatprep.subr.mxu1 %v1207_v24 }
 0x240   :  { %2388 = vmatmul.mubr.f32.vlgmr.msra.gmra.mrb[4].mxu1 %v1196_v40 }
 0x241   :  { %2391 = vmatpush3.msra.mxu1 %v1207_v24  ;;  %2392 = vmatprep.mubr.f32.mxu1 %v1184_v37 }
 0x242   :  { %2395 = vmatprep.subr.mxu1 %v1119_v22 }
 0x248   :  { %2393 = vmatmul.mubr.f32.vlgmr.msra.gmra.mrb[4].mxu1 %v1194_v35 }
 0x249   :  { %2396 = vmatpush3.msra.mxu1 %v1119_v22  ;;  %2397 = vmatprep.mubr.f32.mxu1 %v1184_v37 }
 0x24a   :  { %2515 = vmatprep.subr.bf16.mxu1 %v2514_v59 }
 0x250   :  { %2398 = vmatmul.mubr.f32.vlgmr.msra.gmra.mrb[4].mxu1 %v1194_v35 }
 0x251   :  { %2517 = vmatpush3.bf16.msra.mxu1 %v2514_v59 }
 0x323   :  { %v2399_v63 = vpop.f32.mrb[4].mxu1 }
 0x324   :  { %v2544_v0 = vadd.f32 %v2399_v63, %v2158_v62  ;;  %v1597_v1 = vpop.f32.mrb[5].mxu1 }
 0x325   :  { %v2545_v2 = vadd.f32 %v2158_v62, %v1597_v1 }
 0x326   :  { %v1608_v3 = vmax.f32 %v2544_v0, 0.0 }
 0x327   :  { %v1607_v4 = vmax.f32 %v2545_v2, 0.0 }
 0x328   :  { %v1622_v5 = vsel %vm592_vm1, %v1608_v3, 0 }
 0x329   :  { %v1701_v6 = vand.u32 4294901760, %v1622_v5  ;;  %v1619_v7 = vsel %vm592_vm1, %v1607_v4, 0 }
 0x32a   :  { %v1691_v8 = vand.u32 4294901760, %v1619_v7 }
 0x32b   :  { %v1702_v9 = vsub.f32 %v1622_v5, %v1701_v6 }
 0x32c   :  { %2411 = vmatprep.mubr.f32.mxu0 %v1691_v8  ;;  %v1692_v10 = vsub.f32 %v1619_v7, %v1691_v8 }
 0x32d   :  { %v1703_v11 = vand.u32 4294901760, %v1702_v9  ;;  %2412 = vmatmul.mubr.f32.vlgmr.msra.gmra.mrb[2].mxu0 %v1701_v6 }
 0x32e   :  { %2525 = vmatpush3.bf16.msra.mxu0 %v2522_v60  ;;  %2418 = vmatprep.mubr.f32.mxu0 %v1692_v10  ;;  %v1693_v12 = vand.u32 4294901760, %v1692_v10 }
 0x32f   :  { %v1704_v13 = vsub.f32 %v1702_v9, %v1703_v11  ;;  %2527 = vmatprep.subr.bf16.mxu0 %v2514_v59 }
 0x330   :  { %v1694_v14 = vsub.f32 %v1692_v10, %v1693_v12 }
 0x331   :  { %v1705_v16 = vand.u32 4294901760, %v1704_v13 }
 0x332   :  { %v1695_v15 = vand.u32 4294901760, %v1694_v14 }
 0x334   :  { %2404 = vmatprep.mubr.f32.mxu1 %v1695_v15 }
 0x335   :  { %2405 = vmatmul.mubr.f32.vlgmr.msra.gmra.mrb[6].mxu1 %v1705_v16  ;;  %2419 = vmatmul.mubr.f32.vlgmr.msra.gmra.mrb[2].mxu0 %v1702_v9 }
 0x336   :  { %2529 = vmatpush3.bf16.msra.mxu0 %v2514_v59  ;;  %2425 = vmatprep.mubr.f32.mxu0 %v1693_v12 }
 0x337   :  { %2531 = vmatprep.subr.bf16.mxu0 %v2530_v61 }
 0x33d   :  { %2426 = vmatmul.mubr.f32.vlgmr.msra.gmra.mrb[2].mxu0 %v1703_v11 }
 0x33e   :  { %2533 = vmatpush3.bf16.msra.mxu0 %v2530_v61  ;;  %2432 = vmatprep.mubr.f32.mxu0 %v1691_v8 }
 0x33f   :  { %2535 = vmatprep.subr.bf16.mxu0 %v2514_v59 }
 0x345   :  { %2433 = vmatmul.mubr.f32.vlgmr.msra.gmra.mrb[2].mxu0 %v1701_v6 }
 0x346   :  { %2537 = vmatpush3.bf16.msra.mxu0 %v2514_v59  ;;  %2439 = vmatprep.mubr.f32.mxu0 %v1691_v8 }
 0x34d   :  { %2440 = vmatmul.mubr.f32.vlgmr.msra.gmra.mrb[2].mxu0 %v1701_v6 }
 0x408   :  { %v2406_v17 = vpop.f32.mrb[6].mxu1 }
 0x409   :  { %v1697_v18 = vpop.f32.mrb[7].mxu1  ;;  %v1708_v20 = vadd.f32 %v2406_v17, %v2159_v19 }
 0x40a   :  { %v1698_v21 = vadd.f32 %v2159_v19, %v1697_v18 }
 0x420   :  { %v2441_v22 = vpop.f32.mrb[2].mxu0 }
 0x421   :  { %v2547_v23 = vadd.f32 %v2441_v22, %v1708_v20  ;;  %v2116_v24 = vpop.f32.mrb[3].mxu0 }
 0x422   :  { %v2549_v25 = vadd.f32 %v2116_v24, %v1698_v21 }
 0x423   :  { %v2127_v26 = vsub.f32 0.0, %v2547_v23 }
 0x424   :  { %v2126_v27 = vsub.f32 0.0, %v2549_v25 }
 0x425   :  { %v2130_v28 = vmul.f32 1.442695, %v2127_v26 }
 0x426   :  { %v2128_v29 = vmul.f32 1.442695, %v2126_v27 }
 0x427   :  { %2589 = vpow2.f32 %v2130_v28 }
 0x428   :  { %2591 = vpow2.f32 %v2128_v29 }
 0x431   :  { %v2590_v30 = vpop.eup %2589 }
 0x432   :  { %v2592_v31 = vpop.eup %2591  ;;  %v2133_v32 = vadd.f32 1.0, %v2590_v30 }
 0x433   :  { %v2132_v33 = vadd.f32 1.0, %v2592_v31 }
 0x434   :  { %2593 = vrcp.f32 %v2133_v32 }
 0x435   :  { %2595 = vrcp.f32 %v2132_v33 }
 0x43e   :  { %v2594_v34 = vpop.eup %2593 }
 0x43f   :  { %v2596_v35 = vpop.eup %2595  ;;  %2139 = vst.msk [vmem:[#allocation2 + $0x8] sm:$0xff] %vm46_vm0, %v2594_v34 }
 0x440   :  { %2138 = vst.msk [vmem:[#allocation2] sm:$0xff] %vm46_vm0, %v2596_v35 }
 0x441   :  { %2608 = shalt.err (!%p2605_p4)
}
 0x442   :  { %s2609_s14 = scalar_lea.hbm %s2756_s9, 256 }
 0x443   :  { %p2610_p5 = scmp.ne.s32.totalorder %s2756_s9, %s2609_s14  ;;  %p2613_p6 = scmp.lt.u32.totalorder %s2609_s14, %s2756_s9 }
 0x445   :  { %p2615_p7 = pnand %p2613_p6, %p2610_p5 }
 0x447   :  { %2618 = shalt.err (!%p2615_p7)
}
 0x448   :  { %s2622_s19 = smov 128   ;;  %s2623_s20 = smov 8  }
 0x449   :  { %2151 = dma.vmem_to_hbm [thread:$0]  %s2146_s8, 256, %s2756_s9, [#allocation3], %s2622_s19, %s2622_s19, %s2623_s20  }
 0x44a   :  { %2619 = dma.done.wait [#allocation3], 256  }
 0x44b   :  { %2620 = vsyncadd [#allocation3], 4294967040 }
 0x44c   :  { %2155 = vsyncpa [#allocation3], 1 }

</bundles_post_ra>
